<compile_context>
chip_gen: v5e
topology: v5e:2x2
jax: 0.10.0
libtpu: 0.0.40
codegen_flags: <defaults>
</compile_context>

<pallas_src>
import jax
import jax.numpy as jnp
from jax.experimental import pallas as pl
from jax.experimental.pallas import tpu as pltpu

CIN, COUT, KH, KW = 3, 6, 3, 3
K = CIN * KH * KW  # 27


def _conv_mm_kernel(w_ref, x_ref, b_ref, o_ref):
    # w_ref: (COUT, K)      weights, resident across all M tiles
    # x_ref: (K, TM)        im2col columns for this M tile (lane-dense)
    # b_ref: (COUT, 1)      bias (broadcast along lanes)
    # o_ref: (COUT, TM)     output tile (lane-dense)
    o_ref[...] = (
        jnp.dot(w_ref[...], x_ref[...], preferred_element_type=jnp.float32)
        + b_ref[...]
    ).astype(o_ref.dtype)


def conv2d_zowo(x_nchw, weight_oihw, bias, *, tm=512):
    """Conv2d(3, 6, k=3, stride=1, padding=0) — matches PyTorch semantics."""
    assert tm % 128 == 0, "M tile must be lane-aligned (multiple of 128)"
    N, C, H, W = x_nchw.shape
    assert C == CIN
    Ho, Wo = H - KH + 1, W - KW + 1
    M = N * Ho * Wo

    num_tiles = pl.cdiv(M, tm)
    M_pad = num_tiles * tm

    # ---- glue (plain JAX): im2col to a single (K=27, M) slab.
    # Row order is (c, di, dj), matching weight.reshape(COUT, CIN*KH*KW) (OIHW).
    taps = [
        x_nchw[:, c, di:di + Ho, dj:dj + Wo]
        for c in range(CIN) for di in range(KH) for dj in range(KW)
    ]
    x_cols = jnp.stack(taps, axis=0).reshape(K, M)
    if M_pad != M:
        x_cols = jnp.pad(x_cols, ((0, 0), (0, M_pad - M)))

    w2d = weight_oihw.reshape(COUT, K)
    b2d = bias.reshape(COUT, 1)

    # ---- hot path: one matmul per lane-dense M tile, tiles in parallel.
    out_flat = pl.pallas_call(
        _conv_mm_kernel,
        out_shape=jax.ShapeDtypeStruct((COUT, M_pad), x_nchw.dtype),
        grid_spec=pltpu.PrefetchScalarGridSpec(
            num_scalar_prefetch=0,
            grid=(num_tiles,),
            in_specs=[
                pl.BlockSpec((COUT, K), lambda m: (0, 0)),   # W: full, reused
                pl.BlockSpec((K, tm), lambda m: (0, m)),     # X: stream M tiles
                pl.BlockSpec((COUT, 1), lambda m: (0, 0)),   # bias: full, reused
            ],
            out_specs=pl.BlockSpec((COUT, tm), lambda m: (0, m)),
        ),
        compiler_params=pltpu.CompilerParams(
            dimension_semantics=("parallel",),   # M tiles shard across TCs on v7x
        ),
    )(w2d, x_cols, b2d)

    # ---- glue: back to NCHW.
    out = out_flat[:, :M].reshape(COUT, N, Ho, Wo)
    return jnp.transpose(out, (1, 0, 2, 3))  # (N, Cout, Ho, Wo)


if __name__ == "__main__":
    key = jax.random.PRNGKey(0)
    kx, kw, kb = jax.random.split(key, 3)

    # Small shapes consistent with the module: batch=2, 3 input channels, 16x16 spatial.
    x = jax.random.normal(kx, (2, CIN, 16, 16), dtype=jnp.float32)
    # Deterministic synthetic parameters (Conv2d(3, 6, 3) shapes).
    fan_in = CIN * KH * KW
    bound = 1.0 / (fan_in ** 0.5)
    weight = jax.random.uniform(kw, (COUT, CIN, KH, KW), jnp.float32, -bound, bound)
    bias = jax.random.uniform(kb, (COUT,), jnp.float32, -bound, bound)

    out = conv2d_zowo(x, weight, bias)
    out = jax.block_until_ready(out)

    # Sanity check against XLA's conv (same semantics as PyTorch Conv2d, padding=0).
    ref = jax.lax.conv_general_dilated(
        x, weight, window_strides=(1, 1), padding="VALID",
        dimension_numbers=("NCHW", "OIHW", "NCHW"),
    ) + bias[None, :, None, None]
    assert out.shape == (2, COUT, 14, 14), out.shape
    assert jnp.allclose(out, ref, atol=1e-5, rtol=1e-5), "mismatch vs reference conv"

    print("KERNEL_OK")
</pallas_src>

<mosaic_0001>
module attributes {stable_mosaic.version = 11 : i64} {
  func.func @_conv_mm_kernel(%arg0: i32, %arg1: memref<6x27xf32, #tpu.memory_space<vmem>>, %arg2: memref<27x512xf32, #tpu.memory_space<vmem>>, %arg3: memref<6x1xf32, #tpu.memory_space<vmem>>, %arg4: memref<6x512xf32, #tpu.memory_space<vmem>>) attributes {dimension_semantics = [#tpu.dimension_semantics<parallel>], iteration_bounds = array<i64: 1>, scalar_prefetch = 0 : i64, scratch_operands = 0 : i64, tpu.core_type = #tpu.core_type<tc>, window_params = [{pipeline_mode = #tpu.pipeline_mode<synchronous>, transform_indices = @transform_0, window_bounds = array<i64: 6, 27>}, {transform_indices = @transform_1, window_bounds = array<i64: 27, 512>}, {pipeline_mode = #tpu.pipeline_mode<synchronous>, transform_indices = @transform_2, window_bounds = array<i64: 6, 1>}, {transform_indices = @transform_3, window_bounds = array<i64: 6, 512>}]} {
    %c0 = arith.constant 0 : index
    %c0_0 = arith.constant 0 : index
    %0 = vector.load %arg1[%c0, %c0_0] : memref<6x27xf32, #tpu.memory_space<vmem>>, vector<6x27xf32>
    %c0_1 = arith.constant 0 : index
    %c0_2 = arith.constant 0 : index
    %1 = vector.load %arg2[%c0_1, %c0_2] : memref<27x512xf32, #tpu.memory_space<vmem>>, vector<27x512xf32>
    %cst = arith.constant dense<0.000000e+00> : vector<6x512xf32>
    %2 = tpu.matmul %0, %1, %cst {dimension_numbers = #tpu.dot_dimension_numbers<[1], [0], [0], [1], [0, 0, 1, 1], [], []>} : vector<6x27xf32>, vector<27x512xf32>, vector<6x512xf32> -> vector<6x512xf32>
    %c0_3 = arith.constant 0 : index
    %c0_4 = arith.constant 0 : index
    %3 = vector.load %arg3[%c0_3, %c0_4] : memref<6x1xf32, #tpu.memory_space<vmem>>, vector<6x1xf32>
    %4 = vector.broadcast %3 : vector<6x1xf32> to vector<6x512xf32>
    %5 = arith.addf %2, %4 : vector<6x512xf32>
    %c0_5 = arith.constant 0 : index
    %c0_6 = arith.constant 0 : index
    %6 = vector.load %arg4[%c0_5, %c0_6] : memref<6x512xf32, #tpu.memory_space<vmem>>, vector<6x512xf32>
    tpu.vector_store %arg4[%c0_5, %c0_6], %5 {strides = array<i32>} : memref<6x512xf32, #tpu.memory_space<vmem>>, vector<6x512xf32>,
    return
  }
  func.func @transform_0(%arg0: i32) -> (i32, i32) {
    %c0_i32 = arith.constant 0 : i32
    %c0_i32_0 = arith.constant 0 : i32
    %c0_i32_1 = arith.constant 0 : i32
    return %c0_i32, %c0_i32_0 : i32, i32
  }
  func.func @transform_1(%arg0: i32) -> (i32, i32) {
    %c0_i32 = arith.constant 0 : i32
    %c0_i32_0 = arith.constant 0 : i32
    return %c0_i32, %arg0 : i32, i32
  }
  func.func @transform_2(%arg0: i32) -> (i32, i32) {
    %c0_i32 = arith.constant 0 : i32
    %c0_i32_0 = arith.constant 0 : i32
    %c0_i32_1 = arith.constant 0 : i32
    return %c0_i32, %c0_i32_0 : i32, i32
  }
  func.func @transform_3(%arg0: i32) -> (i32, i32) {
    %c0_i32 = arith.constant 0 : i32
    %c0_i32_0 = arith.constant 0 : i32
    return %c0_i32, %arg0 : i32, i32
  }
}

</mosaic_0001>

<bundles_post_ra>
// kernel: tpu_custom_call.1
= control target key start
LH: loop header
LB: loop body
LE: loop exit
PB: predicated region body
PF: predicated region fallthrough
CT: control target
= control target key end

     0   :  { %8 = vsyncpa [#allocation3], 0  ;;  %s279_s0 = inlined_call_operand.vmem [shape: f32[6,27], index: 0, kind: input, shape index: {}]   ;;  %s280_s1 = inlined_call_operand.hbm [shape: f32[27,512], index: 1, kind: input, shape index: {}]   ;;  %s281_s2 = inlined_call_operand.vmem [shape: f32[6,1], index: 2, kind: input, shape index: {}]   ;;  %s282_s3 = inlined_call_operand.hbm [shape: f32[6,512], index: 3, kind: output, shape index: {}]  }
   0x1   :  { %9 = vsyncpa [#allocation4], 0  ;;  %s16_s14 = sshll.u32 %s280_s1, 4  ;;  %s238_s15 = smov [#allocation2]   ;;  %s17_s14 = int_to_ptr.hbm [resolvable:$true] %s16_s14 }
   0x2   :  { %s18_s16 = sshll.u32 %s238_s15, 4  ;;  %s239_s17 = smov 512   ;;  %s19_s16 = int_to_ptr.vmem [resolvable:$true] %s18_s16 }
   0x3   :  { %s240_s18 = smov 32  }
   0x4   :  { %24 = dma.hbm_to_vmem [thread:$0]  %s17_s14, 2048, %s19_s16, [#allocation3], %s239_s17, %s239_s17, %s240_s18  }
   0x5   :  { %234 = dma.done.wait [#allocation3], 2048  }
   0x6   :  { %235 = vsyncadd [#allocation3], 4294965248  ;;  %v241_v0 = vmov 0   ;;  %vm58_vm0 = vcmask 1042432   ;;  %v46_v1 = vld [vmem:[#allocation2 + $0x70] sm:$0x7] }
   0x7   :  { %185 = vset.pattern.permute.xlu0 %v241_v0  ;;  %v47_v2 = vld [vmem:[#allocation2 + $0x78] sm:$0x7]  ;;  %v42_v3 = vld [vmem:[#allocation2 + $0x50] sm:$0xff]  ;;  %176 = vmatpush.msk.msra.mxu2 %vm58_vm0, %v46_v1  ;;  %v44_v7 = vld [vmem:[#allocation2 + $0x60] sm:$0x7]  ;;  %vm54_vm1 = vcmask 220160  }
   0x8   :  { %178 = vmatpush.msk.msra.mxu3 %vm58_vm0, %v47_v2  ;;  %v43_v4 = vld [vmem:[#allocation2 + $0x58] sm:$0xff]  ;;  %v38_v5 = vld [vmem:[#allocation2 + $0x30] sm:$0xff]  ;;  %v45_v8 = vld [vmem:[#allocation2 + $0x68] sm:$0x7]  ;;  %172 = vmatpush.msk.msra.mxu0 %vm58_vm0, %v44_v7  ;;  %s162_s24 = sshll.u32 %s282_s3, 4  ;;  %s163_s24 = int_to_ptr.hbm [resolvable:$true] %s162_s24 }
   0x9   :  { %v39_v6 = vld [vmem:[#allocation2 + $0x38] sm:$0xff]  ;;  %124 = vmatpush.msra.mxu2 %v42_v3  ;;  %v40_v9 = vld [vmem:[#allocation2 + $0x40] sm:$0xff]  ;;  %174 = vmatpush.msk.msra.mxu1 %vm58_vm0, %v45_v8  ;;  %v34_v10 = vld [vmem:[#allocation2 + $0x10] sm:$0xff] }
   0xa   :  { %144 = vmatpush.msra.mxu3 %v43_v4  ;;  %v35_v11 = vld [vmem:[#allocation2 + $0x18] sm:$0xff]  ;;  %v41_v12 = vld [vmem:[#allocation2 + $0x48] sm:$0xff]  ;;  %v31_v13 = vld [vmem:[%s279_s0] sm:$0x3f]  ;;  %84 = vmatpush.msra.mxu0 %v40_v9  ;;  %s242_s0 = smov [#allocation5]  }
   0xb   :  { %125 = vmatpush.msra.mxu2 %v38_v5  ;;  %104 = vmatpush.msra.mxu1 %v41_v12  ;;  %v36_v14 = vld [vmem:[#allocation2 + $0x20] sm:$0xff]  ;;  %v37_v15 = vld [vmem:[#allocation2 + $0x28] sm:$0xff] }
   0xc   :  { %145 = vmatpush.msra.mxu3 %v39_v6  ;;  %v48_v16 = vld [vmem:[%s281_s2] sm:$0x3f]  ;;  %v33_v18 = vld [vmem:[#allocation2 + $0x8] sm:$0xff]  ;;  %85 = vmatpush.msra.mxu0 %v36_v14  ;;  %s160_s2 = sshll.u32 %s242_s0, 4  ;;  %s161_s2 = int_to_ptr.vmem [resolvable:$true] %s160_s2 }
   0xd   :  { %126 = vmatpush.msra.mxu2 %v34_v10  ;;  %v32_v17 = vld [vmem:[#allocation2] sm:$0xff]  ;;  %105 = vmatpush.msra.mxu1 %v37_v15 }
   0xe   :  { %146 = vmatpush.msra.mxu3 %v35_v11  ;;  %177 = vmatmul.msk.f32.vlgmr.msra.gmra.mxu2 %vm54_vm1, %v31_v13 }
   0xf   :  { %179 = vmatmul.msk.f32.vlgmr.msra.gmra.mxu3 %vm54_vm1, %v31_v13  ;;  %51 = vperm.xlu0 %185, %v48_v16  }
  0x10   :  { %86 = vmatpush.msra.mxu0 %v32_v17  ;;  %106 = vmatpush.msra.mxu1 %v33_v18 }
  0x11   :  { %173 = vmatmul.msk.f32.vlgmr.msra.gmra.mxu0 %vm54_vm1, %v31_v13  ;;  %175 = vmatmul.msk.f32.vlgmr.msra.gmra.mxu1 %vm54_vm1, %v31_v13 }
  0x81   :  { %v52_v19 = vpop.permute.xlu0 %51 }
  0x8e   :  { %v88_v20 = vpop.f32.mrf.mxu0  ;;  %v108_v21 = vpop.f32.mrf.mxu1 }
  0x8f   :  { %v89_v22 = vadd.f32 %v88_v20, %v52_v19  ;;  %v109_v23 = vadd.f32 %v108_v21, %v52_v19 }
  0x91   :  { %v128_v24 = vpop.f32.mrf.mxu2  ;;  %151 = vst [vmem:[#allocation5] sm:$0x3f] %v89_v22 }
  0x92   :  { %v148_v25 = vpop.f32.mrf.mxu3  ;;  %v129_v26 = vadd.f32 %v128_v24, %v52_v19  ;;  %152 = vst [vmem:[#allocation5 + $0x8] sm:$0x3f] %v109_v23 }
  0x93   :  { %v149_v27 = vadd.f32 %v148_v25, %v52_v19 }
  0x94   :  { %153 = vst [vmem:[#allocation5 + $0x10] sm:$0x3f] %v129_v26 }
  0x95   :  { %154 = vst [vmem:[#allocation5 + $0x18] sm:$0x3f] %v149_v27 }
  0x96   :  { %165 = dma.vmem_to_hbm [thread:$0]  %s161_s2, 512, %s163_s24, [#allocation4]  }
  0x97   :  { %236 = dma.done.wait [#allocation4], 512  }
  0x98   :  { %237 = vsyncadd [#allocation4], 4294966784 }
  0x99   :  { %170 = vsyncpa [#allocation3], 1 }
  0x9a   :  { %171 = vsyncpa [#allocation4], 1 }

</bundles_post_ra>
